<compile_context>
chip_gen: v6e
topology: v6e:2x2x1
jax: 0.10.0
libtpu: 0.0.40
codegen_flags: <defaults>
</compile_context>

<pallas_src>
import jax
import jax.numpy as jnp
from jax.experimental import pallas as pl
from jax.experimental.pallas import tpu as pltpu


def _hadamard_mlp_kernel(xi_ref, xj_ref, w1_ref, b1_ref, w2_ref, b2_ref, o_ref):
    # Hadamard product of the packed endpoint embeddings (VPU, native f32).
    had = xi_ref[...] * xj_ref[...]                                     # (tile, Hp)

    # Layer 1: block-diagonal W1^T (P copies) -> per-logical-row x @ W1^T; f32 MXU acc.
    h = jnp.dot(had, w1_ref[...], preferred_element_type=jnp.float32)   # (tile, Hp)
    h = jnp.maximum(h + b1_ref[...], 0.0)

    # TODO(synk): F.dropout is identity at inference (training=False); omitted.

    # Layer 2: block-diagonal (Hp, P) W2 -> one logit per packed logical row.
    out = jnp.dot(h, w2_ref[...], preferred_element_type=jnp.float32) + b2_ref[0, 0]
    o_ref[...] = out.astype(o_ref.dtype)                                # (tile, P)


def _pick_tile(n_rows, row_bytes, *, cap_bytes=1 << 20):
    """Pick the packed-row tile (second-to-last block dim).

    * multiple of 8 sublanes (or the full array when tiny),
    * as large as possible (amortize the ~0.35 us/grid-step overhead) while each
      input block stays under `cap_bytes` (~1 MiB -> ~6-7 MiB total double-buffered
      VMEM, safe even for v5e's 16 MiB default scoped limit),
    * >= 2 grid steps with an even-ish split so the ("parallel",) axis can be
      sharded across both v7x TensorCores without a lopsided remainder.
    """
    if n_rows <= 8:
        return n_rows                                   # single full-array tile
    cap = max(8, (cap_bytes // row_bytes) // 8 * 8)
    steps = max(2, pl.cdiv(n_rows, cap))
    if steps < 8 and steps % 2 == 1:
        steps += 1                                      # even split across 2 TCs
    tile = (pl.cdiv(n_rows, steps) + 7) // 8 * 8
    return max(8, min(tile, cap))


def hadamard_mlp_predictor(x_i, x_j, w1_t, b1, w2_t, b2, *, tile=None):
    """Pallas forward of Hadamard_MLPPredictor (inference).

    x_i, x_j : [N, H] float32 edge-endpoint embeddings.
    w1_t     : [H, H] (= W1.weight.T)      b1 : [H]
    w2_t     : [H, 1] or [H] (= W2.weight.T)   b2 : scalar / [1]
    Returns torch `.squeeze()` of the [N, 1] logits: shape [N] (0-d for N == 1).
    """
    N, H = x_i.shape
    dtype = jnp.float32

    x_i = x_i.astype(dtype)
    x_j = x_j.astype(dtype)
    w1_t = jnp.asarray(w1_t, dtype).reshape(H, H)
    b1 = jnp.asarray(b1, dtype).reshape(H)
    w2 = jnp.asarray(w2_t, dtype).reshape(H, 1)
    b2 = jnp.asarray(b2, dtype).reshape(1, 1)

    # Pack P logical rows per 128-lane physical row (H=32 -> P=4).
    P = 128 // H if (H <= 128 and 128 % H == 0) else 1
    Hp = P * H

    Np = pl.cdiv(N, P) * P
    if Np != N:
        # TODO(synk): this pad is an extra HBM pass over the inputs; feed batches
        # with N % P == 0 to stay on the zero-copy path.
        x_i = jnp.pad(x_i, ((0, Np - N), (0, 0)))
        x_j = jnp.pad(x_j, ((0, Np - N), (0, 0)))

    n_rows = Np // P
    xi_p = x_i.reshape(n_rows, Hp)        # contiguous bit-reshape, no copy
    xj_p = x_j.reshape(n_rows, Hp)

    # Block-diagonal packed weights (tiny, stay resident in VMEM across the grid).
    eye = jnp.eye(P, dtype=dtype)
    w1_blk = jnp.kron(eye, w1_t)                  # (Hp, Hp)
    b1_blk = jnp.tile(b1, (P,)).reshape(1, Hp)    # (1, Hp)
    w2_blk = jnp.kron(eye, w2)                    # (Hp, P)

    if tile is None:
        tile = _pick_tile(n_rows, Hp * 4)
    grid = (pl.cdiv(n_rows, tile),)

    # Advisory cost hint for XLA scheduling around the custom call.
    flops = 2 * N * H * H + 2 * N * H + 2 * N * H
    bytes_accessed = (2 * Np * Hp * 4 + Hp * Hp * 4 + Hp * 4
                      + Hp * P * 4 + 4 + n_rows * P * 4)

    out = pl.pallas_call(
        _hadamard_mlp_kernel,
        out_shape=jax.ShapeDtypeStruct((n_rows, P), dtype),
        grid_spec=pltpu.PrefetchScalarGridSpec(
            num_scalar_prefetch=0,
            grid=grid,
            in_specs=[
                pl.BlockSpec((tile, Hp), lambda i: (i, 0)),          # x_i packed rows
                pl.BlockSpec((tile, Hp), lambda i: (i, 0)),          # x_j packed rows
                pl.BlockSpec((Hp, Hp), lambda i: (0, 0)),            # block-diag W1^T
                pl.BlockSpec((1, Hp), lambda i: (0, 0)),             # tiled b1
                pl.BlockSpec((Hp, P), lambda i: (0, 0)),             # block-diag W2
                pl.BlockSpec(memory_space=pltpu.MemorySpace.SMEM),   # b2 scalar
            ],
            out_specs=pl.BlockSpec((tile, P), lambda i: (i, 0)),
        ),
        compiler_params=pltpu.CompilerParams(
            dimension_semantics=("parallel",),
        ),
        cost_estimate=pl.CostEstimate(
            flops=flops, transcendentals=0, bytes_accessed=bytes_accessed),
    )(xi_p, xj_p, w1_blk, b1_blk, w2_blk, b2)

    flat = out.reshape(Np)[:N]            # (n_rows, P) -> (Np,) is a free reshape
    return flat[0] if N == 1 else flat    # torch .squeeze() semantics


def reference(x_i, x_j, w1_t, b1, w2_t, b2):
    """Pure-JAX f32 reference mirroring the PyTorch forward."""
    h = jnp.dot(x_i * x_j, w1_t, precision=jax.lax.Precision.HIGHEST)
    h = jnp.maximum(h + jnp.reshape(b1, (1, -1)), 0.0)
    out = jnp.dot(h, jnp.reshape(w2_t, (-1, 1)),
                  precision=jax.lax.Precision.HIGHEST) + jnp.reshape(b2, (1, 1))
    return jnp.squeeze(out)


if __name__ == "__main__":
    H = 32      # h_feats

    key = jax.random.PRNGKey(0)
    k_x, k_w1, k_b1, k_w2, k_b2 = jax.random.split(key, 5)

    # Synthetic parameters with nn.Linear(h,h) / nn.Linear(h,1) shapes, stored
    # pre-transposed so the kernel computes x @ W^T + b directly.
    w1_t = jax.random.normal(k_w1, (H, H), dtype=jnp.float32) * 0.1
    b1 = jax.random.normal(k_b1, (H,), dtype=jnp.float32) * 0.1
    w2_t = jax.random.normal(k_w2, (H, 1), dtype=jnp.float32) * 0.1
    b2 = jax.random.normal(k_b2, (1,), dtype=jnp.float32) * 0.1

    # N=1000: zero-copy packed path, 2-step parallel grid. N=7: pad + single tile.
    for N in (1000, 7):
        kx, kj = jax.random.split(jax.random.fold_in(k_x, N))
        x_i = jax.random.normal(kx, (N, H), dtype=jnp.float32)
        x_j = jax.random.normal(kj, (N, H), dtype=jnp.float32)

        out = jax.block_until_ready(
            hadamard_mlp_predictor(x_i, x_j, w1_t, b1, w2_t, b2))
        ref = reference(x_i, x_j, w1_t, b1, w2_t, b2)

        assert out.shape == ref.shape, (out.shape, ref.shape)
        assert jnp.allclose(out, ref, atol=1e-3, rtol=1e-3), (
            f"mismatch vs reference (N={N}): "
            f"max abs err {float(jnp.max(jnp.abs(out - ref)))}")

    print("KERNEL_OK")
</pallas_src>

<mosaic_0001>
module attributes {stable_mosaic.version = 11 : i64} {
  func.func @_hadamard_mlp_kernel(%arg0: i32, %arg1: memref<128x128xf32, #tpu.memory_space<vmem>>, %arg2: memref<128x128xf32, #tpu.memory_space<vmem>>, %arg3: memref<128x128xf32, #tpu.memory_space<vmem>>, %arg4: memref<1x128xf32, #tpu.memory_space<vmem>>, %arg5: memref<128x4xf32, #tpu.memory_space<vmem>>, %arg6: memref<1x1xf32, #tpu.memory_space<smem>>, %arg7: memref<128x4xf32, #tpu.memory_space<vmem>>) attributes {dimension_semantics = [#tpu.dimension_semantics<parallel>], iteration_bounds = array<i64: 2>, scalar_prefetch = 0 : i64, scratch_operands = 0 : i64, tpu.core_type = #tpu.core_type<tc>, window_params = [{transform_indices = @transform_0, window_bounds = array<i64: 128, 128>}, {transform_indices = @transform_1, window_bounds = array<i64: 128, 128>}, {pipeline_mode = #tpu.pipeline_mode<synchronous>, transform_indices = @transform_2, window_bounds = array<i64: 128, 128>}, {pipeline_mode = #tpu.pipeline_mode<synchronous>, transform_indices = @transform_3, window_bounds = array<i64: 1, 128>}, {pipeline_mode = #tpu.pipeline_mode<synchronous>, transform_indices = @transform_4, window_bounds = array<i64: 128, 4>}, {transform_indices = @transform_5, window_bounds = array<i64: 1, 1>}, {transform_indices = @transform_6, window_bounds = array<i64: 128, 4>}]} {
    %c0 = arith.constant 0 : index
    %c0_0 = arith.constant 0 : index
    %0 = vector.load %arg1[%c0, %c0_0] : memref<128x128xf32, #tpu.memory_space<vmem>>, vector<128x128xf32>
    %c0_1 = arith.constant 0 : index
    %c0_2 = arith.constant 0 : index
    %1 = vector.load %arg2[%c0_1, %c0_2] : memref<128x128xf32, #tpu.memory_space<vmem>>, vector<128x128xf32>
    %2 = arith.mulf %0, %1 : vector<128x128xf32>
    %c0_3 = arith.constant 0 : index
    %c0_4 = arith.constant 0 : index
    %3 = vector.load %arg3[%c0_3, %c0_4] : memref<128x128xf32, #tpu.memory_space<vmem>>, vector<128x128xf32>
    %cst = arith.constant dense<0.000000e+00> : vector<128x128xf32>
    %4 = tpu.matmul %2, %3, %cst {dimension_numbers = #tpu.dot_dimension_numbers<[1], [0], [0], [1], [0, 0, 1, 1], [], []>} : vector<128x128xf32>, vector<128x128xf32>, vector<128x128xf32> -> vector<128x128xf32>
    %c0_5 = arith.constant 0 : index
    %c0_6 = arith.constant 0 : index
    %5 = vector.load %arg4[%c0_5, %c0_6] : memref<1x128xf32, #tpu.memory_space<vmem>>, vector<1x128xf32>
    %6 = vector.broadcast %5 : vector<1x128xf32> to vector<128x128xf32>
    %7 = arith.addf %4, %6 : vector<128x128xf32>
    %cst_7 = arith.constant 0.000000e+00 : f32
    %8 = vector.broadcast %cst_7 : f32 to vector<128x128xf32>
    %9 = arith.maximumf %7, %8 : vector<128x128xf32>
    %c0_8 = arith.constant 0 : index
    %c0_9 = arith.constant 0 : index
    %10 = vector.load %arg5[%c0_8, %c0_9] : memref<128x4xf32, #tpu.memory_space<vmem>>, vector<128x4xf32>
    %cst_10 = arith.constant dense<0.000000e+00> : vector<128x4xf32>
    %11 = tpu.matmul %9, %10, %cst_10 {dimension_numbers = #tpu.dot_dimension_numbers<[1], [0], [0], [1], [0, 0, 1, 1], [], []>} : vector<128x128xf32>, vector<128x4xf32>, vector<128x4xf32> -> vector<128x4xf32>
    %c0_11 = arith.constant 0 : index
    %c0_12 = arith.constant 0 : index
    %12 = memref.load %arg6[%c0_11, %c0_12] : memref<1x1xf32, #tpu.memory_space<smem>>
    %13 = vector.broadcast %12 : f32 to vector<128x4xf32>
    %14 = arith.addf %11, %13 : vector<128x4xf32>
    %c0_13 = arith.constant 0 : index
    %c0_14 = arith.constant 0 : index
    %15 = vector.load %arg7[%c0_13, %c0_14] : memref<128x4xf32, #tpu.memory_space<vmem>>, vector<128x4xf32>
    tpu.vector_store %arg7[%c0_13, %c0_14], %14 {strides = array<i32>} : memref<128x4xf32, #tpu.memory_space<vmem>>, vector<128x4xf32>,
    return
  }
  func.func @transform_0(%arg0: i32) -> (i32, i32) {
    %c0_i32 = arith.constant 0 : i32
    %c0_i32_0 = arith.constant 0 : i32
    return %arg0, %c0_i32 : i32, i32
  }
  func.func @transform_1(%arg0: i32) -> (i32, i32) {
    %c0_i32 = arith.constant 0 : i32
    %c0_i32_0 = arith.constant 0 : i32
    return %arg0, %c0_i32 : i32, i32
  }
  func.func @transform_2(%arg0: i32) -> (i32, i32) {
    %c0_i32 = arith.constant 0 : i32
    %c0_i32_0 = arith.constant 0 : i32
    %c0_i32_1 = arith.constant 0 : i32
    return %c0_i32, %c0_i32_0 : i32, i32
  }
  func.func @transform_3(%arg0: i32) -> (i32, i32) {
    %c0_i32 = arith.constant 0 : i32
    %c0_i32_0 = arith.constant 0 : i32
    %c0_i32_1 = arith.constant 0 : i32
    return %c0_i32, %c0_i32_0 : i32, i32
  }
  func.func @transform_4(%arg0: i32) -> (i32, i32) {
    %c0_i32 = arith.constant 0 : i32
    %c0_i32_0 = arith.constant 0 : i32
    %c0_i32_1 = arith.constant 0 : i32
    return %c0_i32, %c0_i32_0 : i32, i32
  }
  func.func @transform_5(%arg0: i32) -> (i32, i32) {
    %c0_i32 = arith.constant 0 : i32
    %c0_i32_0 = arith.constant 0 : i32
    %c0_i32_1 = arith.constant 0 : i32
    return %c0_i32, %c0_i32_0 : i32, i32
  }
  func.func @transform_6(%arg0: i32) -> (i32, i32) {
    %c0_i32 = arith.constant 0 : i32
    %c0_i32_0 = arith.constant 0 : i32
    return %arg0, %c0_i32 : i32, i32
  }
}

</mosaic_0001>

<bundles_post_ra>
// kernel: tpu_custom_call.1
= control target key start
LH: loop header
LB: loop body
LE: loop exit
PB: predicated region body
PF: predicated region fallthrough
CT: control target
= control target key end

     0   :  { %s1530_s0 = inlined_call_operand.hbm [shape: f32[250,128], index: 0, kind: input, shape index: {}]   ;;  %s1531_s1 = inlined_call_operand.hbm [shape: f32[250,128], index: 1, kind: input, shape index: {}]   ;;  %s1532_s2 = inlined_call_operand.vmem [shape: f32[128,128], index: 2, kind: input, shape index: {}]   ;;  %s1533_s3 = inlined_call_operand.vmem [shape: f32[1,128], index: 3, kind: input, shape index: {}]   ;;  %s1534_s4 = inlined_call_operand.vmem [shape: f32[128,4], index: 4, kind: input, shape index: {}]   ;;  %s1535_s5 = inlined_call_operand.<no memory space> [shape: f32[1,1], index: 5, kind: input, shape index: {}]   ;;  %s1536_s6 = inlined_call_operand.vmem [shape: f32[250,4], index: 6, kind: output, shape index: {}]  }
   0x1   :  { %11 = sst [smem:[#allocation2]] %s1535_s5 }
   0x2   :  { %12 = vsyncpa [#allocation4], 0 }
   0x3   :  { %14 = vsyncpa [#allocation4 + $0x1], 0 }
   0x4   :  { %15 = vsyncpa [#allocation6], 0 }
   0x5   :  { %17 = vsyncpa [#allocation6 + $0x1], 0  ;;  %s1198_s23 = smov 0   ;;  %s1200_s24 = smov 0  }
   0x6   :  { %s1202_s25 = smov 0   ;;  %s1204_s26 = smov 0  }
   0x7 LB: > { %s818_s5 = sadd.s32 4294967295, %s1154_s26   ;;  %s1218_s27 = sadd.s32 1, %s1154_s26   ;;  %s1154_s26 = sphi %s1204_s26, %s1546_s26   ;;  %s1150_s25 = sphi %s1202_s25, %s1545_s25   ;;  %s1146_s24 = sphi %s1200_s24, %s1544_s24   ;;  %s1142_s23 = sphi %s1198_s23, %s1543_s23  }
   0x8   : > { %s27_s28 = ssub.s32 %s1154_s26, %s1218_s27  ;;  %s30_s29 = sadd.s32 1, %s1150_s25 }
   0x9   : > { %p28_p0 = scmp.eq.s32.totalorder %s27_s28, 0  ;;  %p37_p1 = scmp.ne.s32.totalorder %s1150_s25, %s1146_s24 }
   0xa   : > { %p38_p2 = scmp.eq.s32.totalorder %s1154_s26, 0  ;;  %p43_p3 = scmp.ne.s32.totalorder %s1146_s24, %s1142_s23 }
   0xb   : > { %s1228_s30 = scalar_select %p28_p0, %s1150_s25, %s30_s29  }
   0xc   : > { %p39_p4 = por %p38_p2, %p37_p1  ;;  %p44_p5 = scmp.eq.s32.totalorder %s818_s5, 0 }
   0xd   : > { %p1025_p6 = scmp.lt.s32.totalorder %s1154_s26, 2  ;;  %s1238_s8 = sand.u32 1, %s1150_s25  }
   0xe   : > { %p1233_p7 = por %p44_p5, %p43_p3  ;;  %s822_s9 = sshll.u32 %s1238_s8, 7 }
   0xf   : > { %s836_s10 = sshll.u32 %s1154_s26, 11  ;;  %s219_s14 = scalar_lea.vmem [#allocation3], %s822_s9 }
  0x10   : > { %s1538_s7 = scalar_select %p1233_p7, 1, 0 }
  0x11   : > { %s1247_s13 = scalar_lea.hbm %s1530_s0, %s836_s10  ;;  %s226_s15 = sshll.u32 %s219_s14, 4  ;;  %s1251_s15 = int_to_ptr.vmem [resolvable:$true] %s226_s15 }
  0x12   : > { %p1253_p8 = pnand %p1025_p6, %p39_p4  ;;  %s216_s17 = scalar_lea.sflag [#allocation4], %s1238_s8 }
  0x13   : > { %s1060_s18 = scalar_lea.hbm %s1247_s13, 2048  ;;  %s1065_s21 = scalar_lea.hbm %s1530_s0, 4096 }
  0x14   : > { %p1061_p10 = scmp.ne.s32.totalorder %s1247_s13, %s1060_s18  ;;  %p1062_p11 = pneg %p1253_p8 }
  0x15   : > { %p1066_p0 = scmp.lt.s32.totalorder %s1247_s13, %s1530_s0  ;;  %p1067_p1 = scmp.lt.s32.totalorder %s1065_s21, %s1060_s18 }
  0x16   : > { %p1063_p12 = pnand %p1062_p11, %p1061_p10 }
  0x17   : > { %p1068_p2 = por %p1067_p1, %p1066_p0 }
  0x18   : > { %p1064_p13 = pneg %p1063_p12 }
  0x1a   : > { %p1069_p3 = pnand %p1068_p2, %p1064_p13 }
  0x1c   : > { %1072 = shalt.err (!%p1069_p3)
}
  0x1d   : > { %s1073_s28 = scalar_lea.vmem %s1251_s15, 2048  ;;  %s1156_s29 = smov [#allocation3]  }
  0x1e   : > { %p1074_p4 = scmp.ne.s32.totalorder %s1251_s15, %s1073_s28  ;;  %s1078_s11 = sshll.u32 %s1156_s29, 4  ;;  %s1079_s11 = int_to_ptr.vmem [resolvable:$false] %s1078_s11 }
  0x1f   : > { %s1080_s12 = scalar_lea.vmem %s1079_s11, 4096  ;;  %p1081_p10 = scmp.lt.s32.totalorder %s1251_s15, %s1079_s11 }
  0x20   : > { %p1076_p5 = pnand %p1074_p4, %p1062_p11  ;;  %p1082_p12 = scmp.lt.s32.totalorder %s1080_s12, %s1073_s28 }
  0x22   : > { %p1077_p6 = pneg %p1076_p5  ;;  %p1083_p9 = por %p1082_p12, %p1081_p10 }
  0x24   : > { %p1084_p0 = pnand %p1083_p9, %p1077_p6 }
  0x26   : > { %1087 = shalt.err (!%p1084_p0)
}
  0x27   : > { %s1157_s14 = smov 128   ;;  %s1158_s18 = smov 8  }
  0x28   : > { %1021 = dma.hbm_to_vmem [thread:$0]  (!%p1253_p8), %s1247_s13, 2048, %s1251_s15, %s216_s17, %s1157_s14, %s1157_s14, %s1158_s18  }
  0x29   : > { %p255_p9 = scmp.lt.s32.totalorder %s1154_s26, 3  ;;  %s1294_s21 = scalar_lea.hbm %s1531_s1, %s836_s10 }
  0x2a   : > { %p1540_p13 = scmp.ge.s32.totalorder %s1154_s26, 1  ;;  %s240_s23 = scalar_lea.vmem [#allocation5], %s822_s9 }
  0x2b   : > { %s247_s28 = sshll.u32 %s240_s23, 4  ;;  %s237_s13 = scalar_lea.sflag [#allocation6], %s1238_s8  ;;  %s1304_s28 = int_to_ptr.vmem [resolvable:$true] %s247_s28 }
  0x2c   : > { %p1298_p1 = pnand %p1540_p13, %p255_p9  ;;  %s1088_s15 = scalar_lea.hbm %s1294_s21, 2048 }
  0x2d   : > { %p1089_p2 = scmp.ne.s32.totalorder %s1294_s21, %s1088_s15  ;;  %s1093_s29 = scalar_lea.hbm %s1531_s1, 4096 }
  0x2e   : > { %p1094_p5 = scmp.lt.s32.totalorder %s1294_s21, %s1531_s1  ;;  %p1095_p6 = scmp.lt.s32.totalorder %s1093_s29, %s1088_s15 }
  0x2f   : > { %p1091_p3 = pnand %p1089_p2, %p1062_p11 }
  0x30   : > { %p1096_p10 = por %p1095_p6, %p1094_p5 }
  0x31   : > { %p1092_p4 = pneg %p1091_p3 }
  0x33   : > { %p1097_p12 = pnand %p1096_p10, %p1092_p4 }
  0x35   : > { %1100 = shalt.err (!%p1097_p12)
}
  0x36   : > { %s1101_s8 = scalar_lea.vmem %s1304_s28, 2048  ;;  %s1159_s9 = smov [#allocation5]  }
  0x37   : > { %p1102_p0 = scmp.ne.s32.totalorder %s1304_s28, %s1101_s8  ;;  %s1106_s19 = sshll.u32 %s1159_s9, 4  ;;  %s1107_s19 = int_to_ptr.vmem [resolvable:$false] %s1106_s19 }
  0x38   : > { %s1108_s20 = scalar_lea.vmem %s1107_s19, 4096  ;;  %p1109_p2 = scmp.lt.s32.totalorder %s1304_s28, %s1107_s19 }
  0x39   : > { %p1104_p9 = pnand %p1102_p0, %p1062_p11  ;;  %p1110_p3 = scmp.lt.s32.totalorder %s1108_s20, %s1101_s8 }
  0x3b   : > { %p1105_p13 = pneg %p1104_p9  ;;  %p1111_p7 = por %p1110_p3, %p1109_p2 }
  0x3d   : > { %p1112_p5 = pnand %p1111_p7, %p1105_p13 }
  0x3f   : > { %1115 = shalt.err (!%p1112_p5)
}
  0x40   : > { %1024 = dma.hbm_to_vmem [thread:$0]  (!%p1253_p8), %s1294_s21, 2048, %s1304_s28, %s237_s13, %s1157_s14, %s1157_s14, %s1158_s18  }
  0x41   : > { %259 = sbr.rel (%p1298_p1) target bundleno = 532 (0x214), region = 44  ;;  %s261_s23 = sand.u32 (!%p1298_p1), 1, %s1146_s24  }
  0x42   : > { %s829_s15 = sshll.u32 (!%p1298_p1), %s261_s23, 7  ;;  %s262_s10 = scalar_lea.sflag (!%p1298_p1), [#allocation4], %s261_s23 }
  0x43   : > { %s1335_s17 = scalar_lea.vmem (!%p1298_p1), [#allocation3], %s829_s15  ;;  %p1542_p7 = scmp.ne.s32.totalorder (!%p1298_p1), %s1538_s7, 0 }
  0x46   : > { %1133 = dma.done.wait (%p1542_p7), %s262_s10, 2048  }
  0x47   : > { %1135 = vsyncadd (%p1542_p7), %s262_s10, 4294965248  ;;  %s271_s16 = scalar_lea.sflag [#allocation6], %s261_s23  ;;  %s1341_s29 = scalar_lea.vmem [#allocation5], %s829_s15 }
  0x48   : > { %1137 = dma.done.wait (%p1542_p7), %s271_s16, 2048  }
  0x49   : > { %1139 = vsyncadd (%p1542_p7), %s271_s16, 4294965248  ;;  %v379_v0 = vld [vmem:[%s1532_s2 + $0x78] sm:$0xff]  ;;  %v378_v1 = vld [vmem:[%s1532_s2 + $0x70] sm:$0xff]  ;;  %s831_s23 = sshll.u32 %s818_s5, 4  ;;  %s564_s15 = sld [smem:[#allocation2]]  ;;  %vm711_vm0 = vcmask 31744  }
  0x4a   : > { %902 = vmatprep.subr.mxu0 %v379_v0  ;;  %v377_v2 = vld [vmem:[%s1532_s2 + $0x68] sm:$0xff]  ;;  %v376_v3 = vld [vmem:[%s1532_s2 + $0x60] sm:$0xff]  ;;  %v375_v6 = vld [vmem:[%s1532_s2 + $0x58] sm:$0xff]  ;;  %p311_p8 = scmp.lt.s32.totalorder %s831_s23, 31 }
  0x4b   : > { %903 = vmatpush3.msra.mxu0 %v379_v0  ;;  %v316_v4 = vld [vmem:[%s1335_s17] sm:$0xff]  ;;  %v374_v8 = vld [vmem:[%s1532_s2 + $0x50] sm:$0xff]  ;;  %v373_v9 = vld [vmem:[%s1532_s2 + $0x48] sm:$0xff] }
  0x4c   : > { %904 = vmatprep.subr.mxu0 %v378_v1  ;;  %v332_v5 = vld [vmem:[%s1341_s29] sm:$0xff]  ;;  %v371_v11 = vld [vmem:[%s1532_s2 + $0x38] sm:$0xff]  ;;  %v370_v12 = vld [vmem:[%s1532_s2 + $0x30] sm:$0xff]  ;;  %s1548_s23 = smov (!%p311_p8, %s831_s23), 31 }
  0x4d   : > { %905 = vmatpush3.msra.mxu0 %v378_v1  ;;  %v348_v7 = vmul.f32 %v332_v5, %v316_v4  ;;  %v372_v10 = vld [vmem:[%s1532_s2 + $0x40] sm:$0xff]  ;;  %v563_v13 = vld [vmem:[%s1534_s4 + $0x78] sm:$0xff]  ;;  %v562_v14 = vld [vmem:[%s1534_s4 + $0x70] sm:$0xff]  ;;  %s832_s10 = sshll.u32 %s1548_s23, 3 }
  0x4e   : > { %906 = vmatprep.subr.mxu0 %v377_v2  ;;  %958 = vmatprep.subr.mxu1 %v563_v13  ;;  %v369_v15 = vld [vmem:[%s1532_s2 + $0x28] sm:$0xff]  ;;  %v368_v17 = vld [vmem:[%s1532_s2 + $0x20] sm:$0xff]  ;;  %v367_v19 = vld [vmem:[%s1532_s2 + $0x18] sm:$0xff]  ;;  %s1483_s18 = scalar_lea.vmem %s1536_s6, %s832_s10 }
  0x4f   : > { %907 = vmatpush3.msra.mxu0 %v377_v2  ;;  %934 = vmatprep.mubr.f32.mxu0 %v348_v7  ;;  %v561_v16 = vld [vmem:[%s1534_s4 + $0x68] sm:$0xff]  ;;  %v560_v18 = vld [vmem:[%s1534_s4 + $0x60] sm:$0xff]  ;;  %v559_v20 = vld [vmem:[%s1534_s4 + $0x58] sm:$0xff] }
  0x50   : > { %908 = vmatprep.subr.mxu0 %v376_v3  ;;  %959 = vmatpush3.msra.mxu1 %v563_v13  ;;  %v366_v21 = vld [vmem:[%s1532_s2 + $0x10] sm:$0xff]  ;;  %v365_v23 = vld [vmem:[%s1532_s2 + $0x8] sm:$0xff]  ;;  %v364_v29 = vld [vmem:[%s1532_s2] sm:$0xff] }
  0x51   : > { %909 = vmatpush3.msra.mxu0 %v376_v3  ;;  %960 = vmatprep.subr.mxu1 %v562_v14  ;;  %v558_v22 = vld [vmem:[%s1534_s4 + $0x50] sm:$0xff]  ;;  %v317_v24 = vld [vmem:[%s1335_s17 + $0x8] sm:$0xff]  ;;  %v556_v30 = vld [vmem:[%s1534_s4 + $0x40] sm:$0xff] }
  0x52   : > { %910 = vmatprep.subr.mxu0 %v375_v6  ;;  %961 = vmatpush3.msra.mxu1 %v562_v14  ;;  %v333_v25 = vld [vmem:[%s1341_s29 + $0x8] sm:$0xff]  ;;  %v318_v27 = vld [vmem:[%s1335_s17 + $0x10] sm:$0xff]  ;;  %v319_v33 = vld [vmem:[%s1335_s17 + $0x18] sm:$0xff] }
  0x53   : > { %911 = vmatpush3.msra.mxu0 %v375_v6  ;;  %962 = vmatprep.subr.mxu1 %v561_v16  ;;  %v557_v26 = vld [vmem:[%s1534_s4 + $0x48] sm:$0xff]  ;;  %v334_v28 = vld [vmem:[%s1341_s29 + $0x10] sm:$0xff]  ;;  %v349_v31 = vmul.f32 %v333_v25, %v317_v24  ;;  %v335_v34 = vld [vmem:[%s1341_s29 + $0x18] sm:$0xff] }
  0x54   : > { %912 = vmatprep.subr.mxu0 %v374_v8  ;;  %963 = vmatpush3.msra.mxu1 %v561_v16  ;;  %v350_v32 = vmul.f32 %v334_v28, %v318_v27  ;;  %v555_v35 = vld [vmem:[%s1534_s4 + $0x38] sm:$0xff]  ;;  %v320_v36 = vld [vmem:[%s1335_s17 + $0x20] sm:$0xff]  ;;  %v554_v38 = vld [vmem:[%s1534_s4 + $0x30] sm:$0xff]  ;;  %v351_v39 = vmul.f32 %v335_v34, %v319_v33 }
  0x55   : > { %913 = vmatpush3.msra.mxu0 %v374_v8  ;;  %964 = vmatprep.subr.mxu1 %v560_v18  ;;  %v336_v37 = vld [vmem:[%s1341_s29 + $0x20] sm:$0xff]  ;;  %v321_v41 = vld [vmem:[%s1335_s17 + $0x28] sm:$0xff]  ;;  %v322_v44 = vld [vmem:[%s1335_s17 + $0x30] sm:$0xff] }
  0x56   : > { %914 = vmatprep.subr.mxu0 %v373_v9  ;;  %965 = vmatpush3.msra.mxu1 %v560_v18  ;;  %v352_v40 = vmul.f32 %v336_v37, %v320_v36  ;;  %v337_v42 = vld [vmem:[%s1341_s29 + $0x28] sm:$0xff]  ;;  %v338_v45 = vld [vmem:[%s1341_s29 + $0x30] sm:$0xff]  ;;  %v552_v46 = vld [vmem:[%s1534_s4 + $0x20] sm:$0xff] }
  0x57   : > { %915 = vmatpush3.msra.mxu0 %v373_v9  ;;  %966 = vmatprep.subr.mxu1 %v559_v20  ;;  %v553_v43 = vld [vmem:[%s1534_s4 + $0x28] sm:$0xff]  ;;  %v353_v47 = vmul.f32 %v337_v42, %v321_v41  ;;  %v354_v48 = vmul.f32 %v338_v45, %v322_v44  ;;  %v323_v49 = vld [vmem:[%s1335_s17 + $0x38] sm:$0xff]  ;;  %v324_v51 = vld [vmem:[%s1335_s17 + $0x40] sm:$0xff] }
  0x58   : > { %916 = vmatprep.subr.mxu0 %v372_v10  ;;  %967 = vmatpush3.msra.mxu1 %v559_v20  ;;  %v339_v50 = vld [vmem:[%s1341_s29 + $0x38] sm:$0xff]  ;;  %v340_v52 = vld [vmem:[%s1341_s29 + $0x40] sm:$0xff]  ;;  %v325_v55 = vld [vmem:[%s1335_s17 + $0x48] sm:$0xff] }
  0x59   : > { %917 = vmatpush3.msra.mxu0 %v372_v10  ;;  %968 = vmatprep.subr.mxu1 %v558_v22  ;;  %v355_v53 = vmul.f32 %v339_v50, %v323_v49  ;;  %v356_v54 = vmul.f32 %v340_v52, %v324_v51  ;;  %v341_v56 = vld [vmem:[%s1341_s29 + $0x48] sm:$0xff]  ;;  %v326_v57 = vld [vmem:[%s1335_s17 + $0x50] sm:$0xff]  ;;  %v327_v61 = vld [vmem:[%s1335_s17 + $0x58] sm:$0xff] }
  0x5a   : > { %918 = vmatprep.subr.mxu0 %v371_v11  ;;  %969 = vmatpush3.msra.mxu1 %v558_v22  ;;  %v342_v58 = vld [vmem:[%s1341_s29 + $0x50] sm:$0xff]  ;;  %v357_v59 = vmul.f32 %v341_v56, %v325_v55  ;;  %v343_v62 = vld [vmem:[%s1341_s29 + $0x58] sm:$0xff]  ;;  %v328_v63 = vld [vmem:[%s1335_s17 + $0x60] sm:$0xff] }
  0x5b   : > { %919 = vmatpush3.msra.mxu0 %v371_v11  ;;  %970 = vmatprep.subr.mxu1 %v557_v26  ;;  %v358_v60 = vmul.f32 %v342_v58, %v326_v57  ;;  %v344_v0 = vld [vmem:[%s1341_s29 + $0x60] sm:$0xff]  ;;  %v359_v1 = vmul.f32 %v343_v62, %v327_v61  ;;  %v329_v3 = vld [vmem:[%s1335_s17 + $0x68] sm:$0xff]  ;;  %v330_v5 = vld [vmem:[%s1335_s17 + $0x70] sm:$0xff] }
  0x5c   : > { %920 = vmatprep.subr.mxu0 %v370_v12  ;;  %971 = vmatpush3.msra.mxu1 %v557_v26  ;;  %v360_v2 = vmul.f32 %v344_v0, %v328_v63  ;;  %v345_v4 = vld [vmem:[%s1341_s29 + $0x68] sm:$0xff]  ;;  %v346_v6 = vld [vmem:[%s1341_s29 + $0x70] sm:$0xff]  ;;  %v331_v9 = vld [vmem:[%s1335_s17 + $0x78] sm:$0xff] }
  0x5d   : > { %921 = vmatpush3.msra.mxu0 %v370_v12  ;;  %972 = vmatprep.subr.mxu1 %v556_v30  ;;  %v361_v7 = vmul.f32 %v345_v4, %v329_v3  ;;  %v362_v8 = vmul.f32 %v346_v6, %v330_v5  ;;  %v347_v10 = vld [vmem:[%s1341_s29 + $0x78] sm:$0xff]  ;;  %v550_v13 = vld [vmem:[%s1534_s4 + $0x10] sm:$0xff]  ;;  %v549_v14 = vld [vmem:[%s1534_s4 + $0x8] sm:$0xff] }
  0x5e   : > { %922 = vmatprep.subr.mxu0 %v369_v15  ;;  %973 = vmatpush3.msra.mxu1 %v556_v30  ;;  %v363_v11 = vmul.f32 %v347_v10, %v331_v9  ;;  %v551_v12 = vld [vmem:[%s1534_s4 + $0x18] sm:$0xff]  ;;  %v833_v16 = vld [vmem:[%s1533_s3] ss:$0 sm:$0xff] }
  0x5f   : > { %923 = vmatpush3.msra.mxu0 %v369_v15  ;;  %974 = vmatprep.subr.mxu1 %v555_v35  ;;  %v548_v15 = vld [vmem:[%s1534_s4] sm:$0xff] }
  0x60   : > { %924 = vmatprep.subr.mxu0 %v368_v17  ;;  %975 = vmatpush3.msra.mxu1 %v555_v35 }
  0x61   : > { %925 = vmatpush3.msra.mxu0 %v368_v17  ;;  %976 = vmatprep.subr.mxu1 %v554_v38 }
  0x62   : > { %926 = vmatprep.subr.mxu0 %v367_v19  ;;  %977 = vmatpush3.msra.mxu1 %v554_v38 }
  0x63   : > { %927 = vmatpush3.msra.mxu0 %v367_v19  ;;  %978 = vmatprep.subr.mxu1 %v553_v43 }
  0x64   : > { %928 = vmatprep.subr.mxu0 %v366_v21  ;;  %979 = vmatpush3.msra.mxu1 %v553_v43 }
  0x65   : > { %929 = vmatpush3.msra.mxu0 %v366_v21  ;;  %980 = vmatprep.subr.mxu1 %v552_v46 }
  0x66   : > { %930 = vmatprep.subr.mxu0 %v365_v23  ;;  %981 = vmatpush3.msra.mxu1 %v552_v46 }
  0x67   : > { %931 = vmatpush3.msra.mxu0 %v365_v23  ;;  %982 = vmatprep.subr.mxu1 %v551_v12 }
  0x68   : > { %932 = vmatprep.subr.mxu0 %v364_v29  ;;  %983 = vmatpush3.msra.mxu1 %v551_v12 }
  0x69   : > { %933 = vmatpush3.msra.mxu0 %v364_v29  ;;  %984 = vmatprep.subr.mxu1 %v550_v13 }
  0x6a   : > { %935 = vmatmul.mubr.f32.vlgmr.msra.gmra.mxu0 %v349_v31  ;;  %985 = vmatpush3.msra.mxu1 %v550_v13 }
  0x6b   : > { %937 = vmatprep.mubr.f32.mxu0 %v350_v32  ;;  %986 = vmatprep.subr.mxu1 %v549_v14 }
  0x6c   : > { %987 = vmatpush3.msra.mxu1 %v549_v14 }
  0x6d   : > { %988 = vmatprep.subr.mxu1 %v548_v15 }
  0x6e   : > { %938 = vmatmul.mubr.f32.gmra.mxu0 %v351_v39  ;;  %989 = vmatpush3.msra.mxu1 %v548_v15 }
  0x6f   : > { %940 = vmatprep.mubr.f32.mxu0 %v352_v40 }
  0x72   : > { %941 = vmatmul.mubr.f32.gmra.mxu0 %v353_v47 }
  0x73   : > { %943 = vmatprep.mubr.f32.mxu0 %v354_v48 }
  0x76   : > { %944 = vmatmul.mubr.f32.gmra.mxu0 %v355_v53 }
  0x77   : > { %946 = vmatprep.mubr.f32.mxu0 %v356_v54 }
  0x7a   : > { %947 = vmatmul.mubr.f32.gmra.mxu0 %v357_v59 }
  0x7b   : > { %949 = vmatprep.mubr.f32.mxu0 %v358_v60 }
  0x7e   : > { %950 = vmatmul.mubr.f32.gmra.mxu0 %v359_v1  ;;  %v565_v1 = vstv %s564_s15 }
  0x7f   : > { %952 = vmatprep.mubr.f32.mxu0 %v360_v2 }
  0x82   : > { %953 = vmatmul.mubr.f32.gmra.mxu0 %v361_v7 }
  0x83   : > { %955 = vmatprep.mubr.f32.mxu0 %v362_v8 }
  0x86   : > { %956 = vmatmul.mubr.f32.gmra.mxu0 %v363_v11 }
 0x12a   : > { %v936_v17 = vpop.f32.mrf.mxu0 }
 0x12b   : > { %v459_v18 = vadd.f32 %v936_v17, %v833_v16 }
 0x12c   : > { %v453_v19 = vpop.f32.mrf.mxu0 }
 0x12d   : > { %v454_v20 = vadd.f32 %v833_v16, %v453_v19  ;;  %v533_v23 = vmax.f32 %v459_v18, 0.0 }
 0x12e   : > { %v939_v21 = vpop.f32.mrf.mxu0 }
 0x12f   : > { %v532_v22 = vmax.f32 %v454_v20, 0.0  ;;  %v469_v24 = vadd.f32 %v939_v21, %v833_v16 }
 0x130   : > { %v463_v25 = vpop.f32.mrf.mxu0 }
 0x131   : > { %v464_v26 = vadd.f32 %v833_v16, %v463_v25  ;;  %990 = vmatprep.mubr.f32.mxu1 %v532_v22  ;;  %v535_v29 = vmax.f32 %v469_v24, 0.0 }
 0x132   : > { %v942_v27 = vpop.f32.mrf.mxu0  ;;  %991 = vmatmul.mubr.f32.vlgmr.msra.gmra.mxu1 %v533_v23 }
 0x133   : > { %v534_v28 = vmax.f32 %v464_v26, 0.0  ;;  %v479_v30 = vadd.f32 %v942_v27, %v833_v16 }
 0x134   : > { %v473_v31 = vpop.f32.mrf.mxu0 }
 0x135   : > { %v474_v32 = vadd.f32 %v833_v16, %v473_v31  ;;  %993 = vmatprep.mubr.f32.mxu1 %v534_v28  ;;  %v537_v35 = vmax.f32 %v479_v30, 0.0 }
 0x136   : > { %v945_v33 = vpop.f32.mrf.mxu0  ;;  %994 = vmatmul.mubr.f32.gmra.mxu1 %v535_v29 }
 0x137   : > { %v536_v34 = vmax.f32 %v474_v32, 0.0  ;;  %v489_v36 = vadd.f32 %v945_v33, %v833_v16 }
 0x138   : > { %v483_v37 = vpop.f32.mrf.mxu0 }
 0x139   : > { %v484_v38 = vadd.f32 %v833_v16, %v483_v37  ;;  %996 = vmatprep.mubr.f32.mxu1 %v536_v34  ;;  %v539_v41 = vmax.f32 %v489_v36, 0.0 }
 0x13a   : > { %v948_v39 = vpop.f32.mrf.mxu0  ;;  %997 = vmatmul.mubr.f32.gmra.mxu1 %v537_v35 }
 0x13b   : > { %v538_v40 = vmax.f32 %v484_v38, 0.0  ;;  %v499_v42 = vadd.f32 %v948_v39, %v833_v16 }
 0x13c   : > { %v493_v43 = vpop.f32.mrf.mxu0 }
 0x13d   : > { %v494_v44 = vadd.f32 %v833_v16, %v493_v43  ;;  %999 = vmatprep.mubr.f32.mxu1 %v538_v40  ;;  %v541_v47 = vmax.f32 %v499_v42, 0.0 }
 0x13e   : > { %v951_v45 = vpop.f32.mrf.mxu0  ;;  %1000 = vmatmul.mubr.f32.gmra.mxu1 %v539_v41 }
 0x13f   : > { %v540_v46 = vmax.f32 %v494_v44, 0.0  ;;  %v509_v48 = vadd.f32 %v951_v45, %v833_v16 }
 0x140   : > { %v503_v49 = vpop.f32.mrf.mxu0 }
 0x141   : > { %v504_v50 = vadd.f32 %v833_v16, %v503_v49  ;;  %1002 = vmatprep.mubr.f32.mxu1 %v540_v46  ;;  %v543_v53 = vmax.f32 %v509_v48, 0.0 }
 0x142   : > { %v954_v51 = vpop.f32.mrf.mxu0  ;;  %1003 = vmatmul.mubr.f32.gmra.mxu1 %v541_v47 }
 0x143   : > { %v542_v52 = vmax.f32 %v504_v50, 0.0  ;;  %v519_v54 = vadd.f32 %v954_v51, %v833_v16 }
 0x144   : > { %v513_v55 = vpop.f32.mrf.mxu0 }
 0x145   : > { %v514_v56 = vadd.f32 %v833_v16, %v513_v55  ;;  %1005 = vmatprep.mubr.f32.mxu1 %v542_v52  ;;  %v545_v59 = vmax.f32 %v519_v54, 0.0 }
 0x146   : > { %v957_v57 = vpop.f32.mrf.mxu0  ;;  %1006 = vmatmul.mubr.f32.gmra.mxu1 %v543_v53 }
 0x147   : > { %v544_v58 = vmax.f32 %v514_v56, 0.0  ;;  %v529_v60 = vadd.f32 %v957_v57, %v833_v16 }
 0x148   : > { %v523_v61 = vpop.f32.mrf.mxu0 }
 0x149   : > { %v524_v62 = vadd.f32 %v833_v16, %v523_v61  ;;  %1008 = vmatprep.mubr.f32.mxu1 %v544_v58  ;;  %v547_v0 = vmax.f32 %v529_v60, 0.0 }
 0x14a   : > { %1009 = vmatmul.mubr.f32.gmra.mxu1 %v545_v59 }
 0x14b   : > { %v546_v63 = vmax.f32 %v524_v62, 0.0 }
 0x14d   : > { %1011 = vmatprep.mubr.f32.mxu1 %v546_v63 }
 0x14e   : > { %1012 = vmatmul.mubr.f32.gmra.mxu1 %v547_v0 }
 0x1f2   : > { %v992_v2 = vpop.f32.mrf.mxu1 }
 0x1f3   : > { %v638_v3 = vadd.f32 %v992_v2, %v565_v1 }
 0x1f4   : > { %v632_v4 = vpop.f32.mrf.mxu1 }
 0x1f5   : > { %713 = vst.msk [vmem:[%s1483_s18 + $0x8] sm:$0xff] %vm711_vm0, %v638_v3  ;;  %v633_v5 = vadd.f32 %v632_v4, %v565_v1 }
 0x1f6   : > { %v995_v6 = vpop.f32.mrf.mxu1 }
 0x1f7   : > { %712 = vst.msk [vmem:[%s1483_s18] sm:$0xff] %vm711_vm0, %v633_v5  ;;  %v648_v7 = vadd.f32 %v995_v6, %v565_v1 }
 0x1f8   : > { %v642_v8 = vpop.f32.mrf.mxu1 }
 0x1f9   : > { %715 = vst.msk [vmem:[%s1483_s18 + $0x18] sm:$0xff] %vm711_vm0, %v648_v7  ;;  %v643_v9 = vadd.f32 %v642_v8, %v565_v1 }
 0x1fa   : > { %v998_v10 = vpop.f32.mrf.mxu1 }
 0x1fb   : > { %714 = vst.msk [vmem:[%s1483_s18 + $0x10] sm:$0xff] %vm711_vm0, %v643_v9  ;;  %v658_v11 = vadd.f32 %v998_v10, %v565_v1 }
 0x1fc   : > { %v652_v12 = vpop.f32.mrf.mxu1 }
 0x1fd   : > { %717 = vst.msk [vmem:[%s1483_s18 + $0x28] sm:$0xff] %vm711_vm0, %v658_v11  ;;  %v653_v13 = vadd.f32 %v652_v12, %v565_v1 }
 0x1fe   : > { %v1001_v14 = vpop.f32.mrf.mxu1 }
 0x1ff   : > { %716 = vst.msk [vmem:[%s1483_s18 + $0x20] sm:$0xff] %vm711_vm0, %v653_v13  ;;  %v668_v15 = vadd.f32 %v1001_v14, %v565_v1 }
 0x200   : > { %v662_v16 = vpop.f32.mrf.mxu1 }
 0x201   : > { %719 = vst.msk [vmem:[%s1483_s18 + $0x38] sm:$0xff] %vm711_vm0, %v668_v15  ;;  %v663_v17 = vadd.f32 %v662_v16, %v565_v1 }
 0x202   : > { %v1004_v18 = vpop.f32.mrf.mxu1 }
 0x203   : > { %718 = vst.msk [vmem:[%s1483_s18 + $0x30] sm:$0xff] %vm711_vm0, %v663_v17  ;;  %v678_v19 = vadd.f32 %v1004_v18, %v565_v1 }
 0x204   : > { %v672_v20 = vpop.f32.mrf.mxu1 }
 0x205   : > { %721 = vst.msk [vmem:[%s1483_s18 + $0x48] sm:$0xff] %vm711_vm0, %v678_v19  ;;  %v673_v21 = vadd.f32 %v672_v20, %v565_v1 }
 0x206   : > { %v1007_v22 = vpop.f32.mrf.mxu1 }
 0x207   : > { %720 = vst.msk [vmem:[%s1483_s18 + $0x40] sm:$0xff] %vm711_vm0, %v673_v21  ;;  %v688_v23 = vadd.f32 %v1007_v22, %v565_v1 }
 0x208   : > { %v682_v24 = vpop.f32.mrf.mxu1 }
 0x209   : > { %723 = vst.msk [vmem:[%s1483_s18 + $0x58] sm:$0xff] %vm711_vm0, %v688_v23  ;;  %v683_v25 = vadd.f32 %v682_v24, %v565_v1 }
 0x20a   : > { %v1010_v26 = vpop.f32.mrf.mxu1 }
 0x20b   : > { %722 = vst.msk [vmem:[%s1483_s18 + $0x50] sm:$0xff] %vm711_vm0, %v683_v25  ;;  %v698_v27 = vadd.f32 %v1010_v26, %v565_v1 }
 0x20c   : > { %v692_v28 = vpop.f32.mrf.mxu1 }
 0x20d   : > { %725 = vst.msk [vmem:[%s1483_s18 + $0x68] sm:$0xff] %vm711_vm0, %v698_v27  ;;  %v693_v29 = vadd.f32 %v692_v28, %v565_v1 }
 0x20e   : > { %v1013_v30 = vpop.f32.mrf.mxu1 }
 0x20f   : > { %724 = vst.msk [vmem:[%s1483_s18 + $0x60] sm:$0xff] %vm711_vm0, %v693_v29  ;;  %v708_v31 = vadd.f32 %v1013_v30, %v565_v1 }
 0x210   : > { %v702_v32 = vpop.f32.mrf.mxu1 }
 0x211   : > { %727 = vst.msk [vmem:[%s1483_s18 + $0x78] sm:$0xff] %vm711_vm0, %v708_v31  ;;  %v703_v33 = vadd.f32 %v702_v32, %v565_v1 }
 0x213   : > { %726 = vst.msk [vmem:[%s1483_s18 + $0x70] sm:$0xff] %vm711_vm0, %v703_v33 }
 0x214 PF: > { %p20_p11 = scmp.ge.s32.totalorder %s1218_s27, 4   ;;  %s1543_s23 = smov %s1146_s24 }
 0x215   : > { %s1544_s24 = smov %s1150_s25  ;;  %s1545_s25 = smov %s1228_s30 }
 0x216   : > { %s1546_s26 = smov %s1218_s27  ;;  %22 = sbr.rel (!%p20_p11) target bundleno = 7 (0x7), region = 97 }
 0x21b   :  { %750 = vsyncpa [#allocation4], 1 }
 0x21c   :  { %752 = vsyncpa [#allocation4 + $0x1], 1 }
 0x21d   :  { %753 = vsyncpa [#allocation6], 1 }
 0x21e   :  { %755 = vsyncpa [#allocation6 + $0x1], 1 }

</bundles_post_ra>
